<compile_context>
chip_gen: v7x
topology: tpu7x:2x2x1
jax: 0.10.0
libtpu: 0.0.40
codegen_flags: <defaults>
</compile_context>

<pallas_src>
import jax
import jax.numpy as jnp
from jax import lax
from jax.experimental import pallas as pl
from jax.experimental.pallas import tpu as pltpu


def gru_kernel(xp_ref, wzr_ref, whh_ref, wph_ref, bp_ref, p_ref, h_ref):
    """One grid step processes `T` consecutive timesteps of the recurrence.

    xp_ref : (T, B, 3H) precomputed input projections [z | r | h_tilde] parts
    wzr_ref: (H, 2H)    fused hidden->(z,r) weights (pre-transposed)
    whh_ref: (H, H)     hidden->candidate weights (pre-transposed)
    wph_ref: (H, Cpad)  output projection, class dim zero-padded to 128 lanes
    bp_ref : (1, Cpad)  output bias (padded)
    p_ref  : (B, Cpad)  logits at the last timestep (written on last grid step)
    h_ref  : (B, H)     persistent hidden-state scratch (VMEM)
    """
    T, _, _ = xp_ref.shape
    H = whh_ref.shape[0]
    tb = pl.program_id(0)

    @pl.when(tb == 0)
    def _():
        h_ref[...] = jnp.zeros_like(h_ref)

    def step(i, h):
        xp_t = xp_ref[i]                                          # (B, 3H)
        zr = jax.nn.sigmoid(
            jnp.dot(h, wzr_ref[...], preferred_element_type=jnp.float32)
            + xp_t[:, : 2 * H])
        z = zr[:, :H]
        r = zr[:, H:]
        h_tilde = jnp.tanh(
            jnp.dot(r * h, whh_ref[...], preferred_element_type=jnp.float32)
            + xp_t[:, 2 * H:])
        return (1.0 - z) * h + z * h_tilde

    # T comes from the (static) block shape, so this Python loop is fully
    # unrolled straight-line code at trace time (== lax.fori_loop unroll=True),
    # giving the LLO scheduler full visibility across adjacent timesteps.
    h = h_ref[...]
    for i in range(T):
        h = step(i, h)
    h_ref[...] = h

    # PyTorch computes p every step but only the last one is returned.
    @pl.when(tb == pl.num_programs(0) - 1)
    def _():
        p_ref[...] = (jnp.dot(h, wph_ref[...],
                              preferred_element_type=jnp.float32)
                      + bp_ref[...])


def prepare_gru_weights(params, *, hidden_dim, num_classes, lane=128):
    """One-time weight preprocessing (split/transpose/fuse/pad). Do NOT call per step."""
    H, C = hidden_dim, num_classes
    f32 = jnp.float32
    W_z, W_r, W = params["W_z"], params["W_r"], params["W"]
    W_ph, b_p = params["W_ph"], params["b_p"]

    # concat([h, x]) @ W.T  ==  h @ W[:, :H].T + x @ W[:, H:].T
    wzr_h = jnp.concatenate([W_z[:, :H].T, W_r[:, :H].T], axis=1).astype(f32)  # (H, 2H)
    whh = W[:, :H].T.astype(f32)                                               # (H, H)
    wx_cat = jnp.concatenate(
        [W_z[:, H:].T, W_r[:, H:].T, W[:, H:].T], axis=1).astype(f32)          # (E, 3H)

    c_pad = ((C + lane - 1) // lane) * lane
    wph = jnp.zeros((H, c_pad), f32).at[:, :C].set(W_ph.T.astype(f32))         # (H, Cpad)
    bp = jnp.zeros((1, c_pad), f32).at[:, :C].set(b_p.astype(f32))             # (1, Cpad)

    return {
        "embed": params["embed"].astype(f32),
        "wx_cat": wx_cat,
        "wzr_h": wzr_h,
        "whh": whh,
        "wph": wph,
        "bp": bp,
    }


def _pick_time_block(seq_length, max_block=8):
    for t in range(min(seq_length, max_block), 0, -1):
        if seq_length % t == 0:
            return t
    return 1


def gru_forward(x, prepared, *, seq_length, hidden_dim, num_classes,
                time_block=None):
    """x: integer token ids of shape (batch, seq_length, 1) or (batch, seq_length)."""
    # Squeeze ONLY the trailing feature axis (never batch/seq dims of size 1).
    x_ids = x[..., 0] if x.ndim == 3 else x          # (B, S)
    B, S = x_ids.shape
    assert S == seq_length
    H, C = hidden_dim, num_classes
    c_pad = prepared["wph"].shape[1]

    if time_block is None or seq_length % time_block != 0:
        time_block = _pick_time_block(seq_length)
    T = time_block
    grid = (S // T,)

    # Embedding lookup in plain JAX, already time-major -> (S, B, E).
    ex = jnp.take(prepared["embed"], x_ids.T.astype(jnp.int32), axis=0)

    # Hoisted input projection: ONE large matmul off the serial recurrence path.
    xp = jnp.einsum("sbe,eh->sbh", ex, prepared["wx_cat"])       # (S, B, 3H)
    xp = xp.astype(jnp.float32)

    p_full = pl.pallas_call(
        gru_kernel,
        out_shape=jax.ShapeDtypeStruct((B, c_pad), jnp.float32),
        grid_spec=pltpu.PrefetchScalarGridSpec(
            num_scalar_prefetch=0,
            grid=grid,
            in_specs=[
                # per-chunk activations: pipelined/double-buffered across grid steps
                pl.BlockSpec((T, B, 3 * H), lambda tb: (tb, 0, 0)),
                # weights: constant index_map -> stay resident in VMEM
                pl.BlockSpec((H, 2 * H), lambda tb: (0, 0)),
                pl.BlockSpec((H, H), lambda tb: (0, 0)),
                pl.BlockSpec((H, c_pad), lambda tb: (0, 0)),
                pl.BlockSpec((1, c_pad), lambda tb: (0, 0)),
            ],
            out_specs=pl.BlockSpec((B, c_pad), lambda tb: (0, 0)),
            scratch_shapes=[pltpu.VMEM((B, H), jnp.float32)],
        ),
        compiler_params=pltpu.CompilerParams(
            dimension_semantics=("arbitrary",),   # time axis is sequential
        ),
    )(xp, prepared["wzr_h"], prepared["whh"], prepared["wph"], prepared["bp"])

    return p_full[:, :C]


def gru_reference(x, params, *, seq_length, hidden_dim, num_classes):
    """Pure-JAX reference mirroring the PyTorch forward exactly."""
    embed, W_z, W_r, W, W_ph, b_p = (params["embed"], params["W_z"],
                                     params["W_r"], params["W"],
                                     params["W_ph"], params["b_p"])
    x = x[..., 0] if x.ndim == 3 else x
    B = x.shape[0]
    h = jnp.zeros((B, hidden_dim), jnp.float32)
    embed_x = jnp.take(embed, x.astype(jnp.int32), axis=0)
    p = None
    for t in range(seq_length):
        x_t = embed_x[:, t]
        hx = jnp.concatenate([h, x_t], axis=1)
        z = jax.nn.sigmoid(hx @ W_z.T)
        r = jax.nn.sigmoid(hx @ W_r.T)
        rhx = jnp.concatenate([r * h, x_t], axis=1)
        h_tilde = jnp.tanh(rhx @ W.T)
        h = (1 - z) * h + z * h_tilde
        p = h @ W_ph.T + b_p
    return p


def init_params(key, *, input_dim, hidden_dim, num_classes, embedding_size=10):
    """Matches the PyTorch module's init scheme:
    - embed.weight ~ N(0, 1)
    - W_z, W_r, W, W_ph: kaiming_normal_(nonlinearity='linear')
      => N(0, 1/sqrt(fan_in)), fan_in = second dim
    - b_p = zeros
    """
    concat = embedding_size + hidden_dim
    k_emb, k_z, k_r, k_w, k_p = jax.random.split(key, 5)
    return {
        "embed": jax.random.normal(k_emb, (input_dim, embedding_size),
                                   jnp.float32),
        "W_z": jax.random.normal(k_z, (hidden_dim, concat), jnp.float32)
               / jnp.sqrt(concat),
        "W_r": jax.random.normal(k_r, (hidden_dim, concat), jnp.float32)
               / jnp.sqrt(concat),
        "W": jax.random.normal(k_w, (hidden_dim, concat), jnp.float32)
             / jnp.sqrt(concat),
        "W_ph": jax.random.normal(k_p, (num_classes, hidden_dim), jnp.float32)
                / jnp.sqrt(hidden_dim),
        "b_p": jnp.zeros((num_classes,), jnp.float32),
    }


if __name__ == "__main__":
    # Small shapes consistent with the module's forward.
    seq_length = 8
    input_dim = 4        # vocabulary size for the embedding
    hidden_dim = 32
    num_classes = 10
    batch_size = 8       # multiple of 8 sublanes

    key = jax.random.PRNGKey(0)
    k_params, k_x = jax.random.split(key)
    params = init_params(k_params, input_dim=input_dim, hidden_dim=hidden_dim,
                         num_classes=num_classes)

    # One-time weight preprocessing (hoisted out of the forward pass).
    prepared = prepare_gru_weights(params, hidden_dim=hidden_dim,
                                   num_classes=num_classes)

    # Integer token ids, shape (batch, seq, 1) like the palindrome dataset.
    x = jax.random.randint(k_x, (batch_size, seq_length, 1), 0, input_dim,
                           dtype=jnp.int32)

    p_kernel = gru_forward(x, prepared, seq_length=seq_length,
                           hidden_dim=hidden_dim, num_classes=num_classes,
                           time_block=4)   # grid of 2 chunks -> exercises pipelining
    p_kernel = jax.block_until_ready(p_kernel)

    p_ref = gru_reference(x, params, seq_length=seq_length,
                          hidden_dim=hidden_dim, num_classes=num_classes)
    assert p_kernel.shape == (batch_size, num_classes)
    assert jnp.allclose(p_kernel, p_ref, atol=1e-5, rtol=1e-5), (
        "kernel output mismatch vs reference")

    print("KERNEL_OK")
</pallas_src>

<mosaic_0001>
module attributes {stable_mosaic.version = 11 : i64} {
  func.func @gru_kernel(%arg0: i32, %arg1: memref<4x8x96xf32, #tpu.memory_space<vmem>>, %arg2: memref<32x64xf32, #tpu.memory_space<vmem>>, %arg3: memref<32x32xf32, #tpu.memory_space<vmem>>, %arg4: memref<32x128xf32, #tpu.memory_space<vmem>>, %arg5: memref<1x128xf32, #tpu.memory_space<vmem>>, %arg6: memref<8x128xf32, #tpu.memory_space<vmem>>, %arg7: memref<8x32xf32, #tpu.memory_space<vmem>>) attributes {dimension_semantics = [#tpu.dimension_semantics<arbitrary>], iteration_bounds = array<i64: 2>, scalar_prefetch = 0 : i64, scratch_operands = 1 : i64, tpu.core_type = #tpu.core_type<tc>, window_params = [{transform_indices = @transform_0, window_bounds = array<i64: 4, 8, 96>}, {pipeline_mode = #tpu.pipeline_mode<synchronous>, transform_indices = @transform_1, window_bounds = array<i64: 32, 64>}, {pipeline_mode = #tpu.pipeline_mode<synchronous>, transform_indices = @transform_2, window_bounds = array<i64: 32, 32>}, {pipeline_mode = #tpu.pipeline_mode<synchronous>, transform_indices = @transform_3, window_bounds = array<i64: 32, 128>}, {pipeline_mode = #tpu.pipeline_mode<synchronous>, transform_indices = @transform_4, window_bounds = array<i64: 1, 128>}, {pipeline_mode = #tpu.pipeline_mode<synchronous>, transform_indices = @transform_5, window_bounds = array<i64: 8, 128>}]} {
    %c0_i32 = arith.constant 0 : i32
    %0 = arith.cmpi eq, %arg0, %c0_i32 : i32
    %1 = arith.extui %0 : i1 to i32
    %c0_i32_0 = arith.constant 0 : i32
    %2 = arith.cmpi ne, %1, %c0_i32_0 : i32
    scf.if %2 {
      %cst_45 = arith.constant 0.000000e+00 : f32
      %104 = vector.broadcast %cst_45 : f32 to vector<8x32xf32>
      %c0_46 = arith.constant 0 : index
      %c0_47 = arith.constant 0 : index
      %105 = vector.load %arg7[%c0_46, %c0_47] : memref<8x32xf32, #tpu.memory_space<vmem>>, vector<8x32xf32>
      tpu.vector_store %arg7[%c0_46, %c0_47], %104 {strides = array<i32>} : memref<8x32xf32, #tpu.memory_space<vmem>>, vector<8x32xf32>,
    } else {
    }
    %c0 = arith.constant 0 : index
    %c0_1 = arith.constant 0 : index
    %3 = vector.load %arg7[%c0, %c0_1] : memref<8x32xf32, #tpu.memory_space<vmem>>, vector<8x32xf32>
    %c0_2 = arith.constant 0 : index
    %c0_3 = arith.constant 0 : index
    %c0_4 = arith.constant 0 : index
    %4 = vector.load %arg1[%c0_2, %c0_3, %c0_4] : memref<4x8x96xf32, #tpu.memory_space<vmem>>, vector<1x8x96xf32>
    %5 = vector.shape_cast %4 : vector<1x8x96xf32> to vector<8x96xf32>
    %c0_5 = arith.constant 0 : index
    %c0_6 = arith.constant 0 : index
    %6 = vector.load %arg2[%c0_5, %c0_6] : memref<32x64xf32, #tpu.memory_space<vmem>>, vector<32x64xf32>
    %cst = arith.constant dense<0.000000e+00> : vector<8x64xf32>
    %7 = tpu.matmul %3, %6, %cst {dimension_numbers = #tpu.dot_dimension_numbers<[1], [0], [0], [1], [0, 0, 1, 1], [], []>} : vector<8x32xf32>, vector<32x64xf32>, vector<8x64xf32> -> vector<8x64xf32>
    %8 = vector.extract_strided_slice %5 {offsets = [0, 0], sizes = [8, 64], strides = [1, 1]} : vector<8x96xf32> to vector<8x64xf32>
    %9 = arith.addf %7, %8 : vector<8x64xf32>
    %10 = arith.negf %9 : vector<8x64xf32>
    %11 = math.exp %10 : vector<8x64xf32>
    %cst_7 = arith.constant 1.000000e+00 : f32
    %12 = vector.broadcast %cst_7 : f32 to vector<8x64xf32>
    %13 = arith.addf %12, %11 : vector<8x64xf32>
    %14 = arith.divf %12, %13 : vector<8x64xf32>
    %15 = vector.extract_strided_slice %14 {offsets = [0, 0], sizes = [8, 32], strides = [1, 1]} : vector<8x64xf32> to vector<8x32xf32>
    %16 = vector.extract_strided_slice %14 {offsets = [0, 32], sizes = [8, 32], strides = [1, 1]} : vector<8x64xf32> to vector<8x32xf32>
    %17 = arith.mulf %16, %3 : vector<8x32xf32>
    %c0_8 = arith.constant 0 : index
    %c0_9 = arith.constant 0 : index
    %18 = vector.load %arg3[%c0_8, %c0_9] : memref<32x32xf32, #tpu.memory_space<vmem>>, vector<32x32xf32>
    %cst_10 = arith.constant dense<0.000000e+00> : vector<8x32xf32>
    %19 = tpu.matmul %17, %18, %cst_10 {dimension_numbers = #tpu.dot_dimension_numbers<[1], [0], [0], [1], [0, 0, 1, 1], [], []>} : vector<8x32xf32>, vector<32x32xf32>, vector<8x32xf32> -> vector<8x32xf32>
    %20 = vector.extract_strided_slice %5 {offsets = [0, 64], sizes = [8, 32], strides = [1, 1]} : vector<8x96xf32> to vector<8x32xf32>
    %21 = arith.addf %19, %20 : vector<8x32xf32>
    %22 = math.tanh %21 : vector<8x32xf32>
    %cst_11 = arith.constant 1.000000e+00 : f32
    %23 = vector.broadcast %cst_11 : f32 to vector<8x32xf32>
    %24 = arith.subf %23, %15 : vector<8x32xf32>
    %25 = arith.mulf %24, %3 : vector<8x32xf32>
    %26 = arith.mulf %15, %22 : vector<8x32xf32>
    %27 = arith.addf %25, %26 : vector<8x32xf32>
    %c1 = arith.constant 1 : index
    %c0_12 = arith.constant 0 : index
    %c0_13 = arith.constant 0 : index
    %28 = vector.load %arg1[%c1, %c0_12, %c0_13] : memref<4x8x96xf32, #tpu.memory_space<vmem>>, vector<1x8x96xf32>
    %29 = vector.shape_cast %28 : vector<1x8x96xf32> to vector<8x96xf32>
    %c0_14 = arith.constant 0 : index
    %c0_15 = arith.constant 0 : index
    %30 = vector.load %arg2[%c0_14, %c0_15] : memref<32x64xf32, #tpu.memory_space<vmem>>, vector<32x64xf32>
    %cst_16 = arith.constant dense<0.000000e+00> : vector<8x64xf32>
    %31 = tpu.matmul %27, %30, %cst_16 {dimension_numbers = #tpu.dot_dimension_numbers<[1], [0], [0], [1], [0, 0, 1, 1], [], []>} : vector<8x32xf32>, vector<32x64xf32>, vector<8x64xf32> -> vector<8x64xf32>
    %32 = vector.extract_strided_slice %29 {offsets = [0, 0], sizes = [8, 64], strides = [1, 1]} : vector<8x96xf32> to vector<8x64xf32>
    %33 = arith.addf %31, %32 : vector<8x64xf32>
    %34 = arith.negf %33 : vector<8x64xf32>
    %35 = math.exp %34 : vector<8x64xf32>
    %cst_17 = arith.constant 1.000000e+00 : f32
    %36 = vector.broadcast %cst_17 : f32 to vector<8x64xf32>
    %37 = arith.addf %36, %35 : vector<8x64xf32>
    %38 = arith.divf %36, %37 : vector<8x64xf32>
    %39 = vector.extract_strided_slice %38 {offsets = [0, 0], sizes = [8, 32], strides = [1, 1]} : vector<8x64xf32> to vector<8x32xf32>
    %40 = vector.extract_strided_slice %38 {offsets = [0, 32], sizes = [8, 32], strides = [1, 1]} : vector<8x64xf32> to vector<8x32xf32>
    %41 = arith.mulf %40, %27 : vector<8x32xf32>
    %c0_18 = arith.constant 0 : index
    %c0_19 = arith.constant 0 : index
    %42 = vector.load %arg3[%c0_18, %c0_19] : memref<32x32xf32, #tpu.memory_space<vmem>>, vector<32x32xf32>
    %cst_20 = arith.constant dense<0.000000e+00> : vector<8x32xf32>
    %43 = tpu.matmul %41, %42, %cst_20 {dimension_numbers = #tpu.dot_dimension_numbers<[1], [0], [0], [1], [0, 0, 1, 1], [], []>} : vector<8x32xf32>, vector<32x32xf32>, vector<8x32xf32> -> vector<8x32xf32>
    %44 = vector.extract_strided_slice %29 {offsets = [0, 64], sizes = [8, 32], strides = [1, 1]} : vector<8x96xf32> to vector<8x32xf32>
    %45 = arith.addf %43, %44 : vector<8x32xf32>
    %46 = math.tanh %45 : vector<8x32xf32>
    %cst_21 = arith.constant 1.000000e+00 : f32
    %47 = vector.broadcast %cst_21 : f32 to vector<8x32xf32>
    %48 = arith.subf %47, %39 : vector<8x32xf32>
    %49 = arith.mulf %48, %27 : vector<8x32xf32>
    %50 = arith.mulf %39, %46 : vector<8x32xf32>
    %51 = arith.addf %49, %50 : vector<8x32xf32>
    %c2 = arith.constant 2 : index
    %c0_22 = arith.constant 0 : index
    %c0_23 = arith.constant 0 : index
    %52 = vector.load %arg1[%c2, %c0_22, %c0_23] : memref<4x8x96xf32, #tpu.memory_space<vmem>>, vector<1x8x96xf32>
    %53 = vector.shape_cast %52 : vector<1x8x96xf32> to vector<8x96xf32>
    %c0_24 = arith.constant 0 : index
    %c0_25 = arith.constant 0 : index
    %54 = vector.load %arg2[%c0_24, %c0_25] : memref<32x64xf32, #tpu.memory_space<vmem>>, vector<32x64xf32>
    %cst_26 = arith.constant dense<0.000000e+00> : vector<8x64xf32>
    %55 = tpu.matmul %51, %54, %cst_26 {dimension_numbers = #tpu.dot_dimension_numbers<[1], [0], [0], [1], [0, 0, 1, 1], [], []>} : vector<8x32xf32>, vector<32x64xf32>, vector<8x64xf32> -> vector<8x64xf32>
    %56 = vector.extract_strided_slice %53 {offsets = [0, 0], sizes = [8, 64], strides = [1, 1]} : vector<8x96xf32> to vector<8x64xf32>
    %57 = arith.addf %55, %56 : vector<8x64xf32>
    %58 = arith.negf %57 : vector<8x64xf32>
    %59 = math.exp %58 : vector<8x64xf32>
    %cst_27 = arith.constant 1.000000e+00 : f32
    %60 = vector.broadcast %cst_27 : f32 to vector<8x64xf32>
    %61 = arith.addf %60, %59 : vector<8x64xf32>
    %62 = arith.divf %60, %61 : vector<8x64xf32>
    %63 = vector.extract_strided_slice %62 {offsets = [0, 0], sizes = [8, 32], strides = [1, 1]} : vector<8x64xf32> to vector<8x32xf32>
    %64 = vector.extract_strided_slice %62 {offsets = [0, 32], sizes = [8, 32], strides = [1, 1]} : vector<8x64xf32> to vector<8x32xf32>
    %65 = arith.mulf %64, %51 : vector<8x32xf32>
    %c0_28 = arith.constant 0 : index
    %c0_29 = arith.constant 0 : index
    %66 = vector.load %arg3[%c0_28, %c0_29] : memref<32x32xf32, #tpu.memory_space<vmem>>, vector<32x32xf32>
    %cst_30 = arith.constant dense<0.000000e+00> : vector<8x32xf32>
    %67 = tpu.matmul %65, %66, %cst_30 {dimension_numbers = #tpu.dot_dimension_numbers<[1], [0], [0], [1], [0, 0, 1, 1], [], []>} : vector<8x32xf32>, vector<32x32xf32>, vector<8x32xf32> -> vector<8x32xf32>
    %68 = vector.extract_strided_slice %53 {offsets = [0, 64], sizes = [8, 32], strides = [1, 1]} : vector<8x96xf32> to vector<8x32xf32>
    %69 = arith.addf %67, %68 : vector<8x32xf32>
    %70 = math.tanh %69 : vector<8x32xf32>
    %cst_31 = arith.constant 1.000000e+00 : f32
    %71 = vector.broadcast %cst_31 : f32 to vector<8x32xf32>
    %72 = arith.subf %71, %63 : vector<8x32xf32>
    %73 = arith.mulf %72, %51 : vector<8x32xf32>
    %74 = arith.mulf %63, %70 : vector<8x32xf32>
    %75 = arith.addf %73, %74 : vector<8x32xf32>
    %c3 = arith.constant 3 : index
    %c0_32 = arith.constant 0 : index
    %c0_33 = arith.constant 0 : index
    %76 = vector.load %arg1[%c3, %c0_32, %c0_33] : memref<4x8x96xf32, #tpu.memory_space<vmem>>, vector<1x8x96xf32>
    %77 = vector.shape_cast %76 : vector<1x8x96xf32> to vector<8x96xf32>
    %c0_34 = arith.constant 0 : index
    %c0_35 = arith.constant 0 : index
    %78 = vector.load %arg2[%c0_34, %c0_35] : memref<32x64xf32, #tpu.memory_space<vmem>>, vector<32x64xf32>
    %cst_36 = arith.constant dense<0.000000e+00> : vector<8x64xf32>
    %79 = tpu.matmul %75, %78, %cst_36 {dimension_numbers = #tpu.dot_dimension_numbers<[1], [0], [0], [1], [0, 0, 1, 1], [], []>} : vector<8x32xf32>, vector<32x64xf32>, vector<8x64xf32> -> vector<8x64xf32>
    %80 = vector.extract_strided_slice %77 {offsets = [0, 0], sizes = [8, 64], strides = [1, 1]} : vector<8x96xf32> to vector<8x64xf32>
    %81 = arith.addf %79, %80 : vector<8x64xf32>
    %82 = arith.negf %81 : vector<8x64xf32>
    %83 = math.exp %82 : vector<8x64xf32>
    %cst_37 = arith.constant 1.000000e+00 : f32
    %84 = vector.broadcast %cst_37 : f32 to vector<8x64xf32>
    %85 = arith.addf %84, %83 : vector<8x64xf32>
    %86 = arith.divf %84, %85 : vector<8x64xf32>
    %87 = vector.extract_strided_slice %86 {offsets = [0, 0], sizes = [8, 32], strides = [1, 1]} : vector<8x64xf32> to vector<8x32xf32>
    %88 = vector.extract_strided_slice %86 {offsets = [0, 32], sizes = [8, 32], strides = [1, 1]} : vector<8x64xf32> to vector<8x32xf32>
    %89 = arith.mulf %88, %75 : vector<8x32xf32>
    %c0_38 = arith.constant 0 : index
    %c0_39 = arith.constant 0 : index
    %90 = vector.load %arg3[%c0_38, %c0_39] : memref<32x32xf32, #tpu.memory_space<vmem>>, vector<32x32xf32>
    %cst_40 = arith.constant dense<0.000000e+00> : vector<8x32xf32>
    %91 = tpu.matmul %89, %90, %cst_40 {dimension_numbers = #tpu.dot_dimension_numbers<[1], [0], [0], [1], [0, 0, 1, 1], [], []>} : vector<8x32xf32>, vector<32x32xf32>, vector<8x32xf32> -> vector<8x32xf32>
    %92 = vector.extract_strided_slice %77 {offsets = [0, 64], sizes = [8, 32], strides = [1, 1]} : vector<8x96xf32> to vector<8x32xf32>
    %93 = arith.addf %91, %92 : vector<8x32xf32>
    %94 = math.tanh %93 : vector<8x32xf32>
    %cst_41 = arith.constant 1.000000e+00 : f32
    %95 = vector.broadcast %cst_41 : f32 to vector<8x32xf32>
    %96 = arith.subf %95, %87 : vector<8x32xf32>
    %97 = arith.mulf %96, %75 : vector<8x32xf32>
    %98 = arith.mulf %87, %94 : vector<8x32xf32>
    %99 = arith.addf %97, %98 : vector<8x32xf32>
    %c0_42 = arith.constant 0 : index
    %c0_43 = arith.constant 0 : index
    %100 = vector.load %arg7[%c0_42, %c0_43] : memref<8x32xf32, #tpu.memory_space<vmem>>, vector<8x32xf32>
    tpu.vector_store %arg7[%c0_42, %c0_43], %99 {strides = array<i32>} : memref<8x32xf32, #tpu.memory_space<vmem>>, vector<8x32xf32>,
    %c1_i32 = arith.constant 1 : i32
    %101 = arith.cmpi eq, %arg0, %c1_i32 : i32
    %102 = arith.extui %101 : i1 to i32
    %c0_i32_44 = arith.constant 0 : i32
    %103 = arith.cmpi ne, %102, %c0_i32_44 : i32
    scf.if %103 {
      %c0_45 = arith.constant 0 : index
      %c0_46 = arith.constant 0 : index
      %104 = vector.load %arg4[%c0_45, %c0_46] : memref<32x128xf32, #tpu.memory_space<vmem>>, vector<32x128xf32>
      %cst_47 = arith.constant dense<0.000000e+00> : vector<8x128xf32>
      %105 = tpu.matmul %99, %104, %cst_47 {dimension_numbers = #tpu.dot_dimension_numbers<[1], [0], [0], [1], [0, 0, 1, 1], [], []>} : vector<8x32xf32>, vector<32x128xf32>, vector<8x128xf32> -> vector<8x128xf32>
      %c0_48 = arith.constant 0 : index
      %c0_49 = arith.constant 0 : index
      %106 = vector.load %arg5[%c0_48, %c0_49] : memref<1x128xf32, #tpu.memory_space<vmem>>, vector<1x128xf32>
      %107 = vector.broadcast %106 : vector<1x128xf32> to vector<8x128xf32>
      %108 = arith.addf %105, %107 : vector<8x128xf32>
      %c0_50 = arith.constant 0 : index
      %c0_51 = arith.constant 0 : index
      %109 = vector.load %arg6[%c0_50, %c0_51] : memref<8x128xf32, #tpu.memory_space<vmem>>, vector<8x128xf32>
      tpu.vector_store %arg6[%c0_50, %c0_51], %108 {strides = array<i32>} : memref<8x128xf32, #tpu.memory_space<vmem>>, vector<8x128xf32>,
    } else {
    }
    return
  }
  func.func @transform_0(%arg0: i32) -> (i32, i32, i32) {
    %c0_i32 = arith.constant 0 : i32
    %c0_i32_0 = arith.constant 0 : i32
    %c0_i32_1 = arith.constant 0 : i32
    return %arg0, %c0_i32, %c0_i32_0 : i32, i32, i32
  }
  func.func @transform_1(%arg0: i32) -> (i32, i32) {
    %c0_i32 = arith.constant 0 : i32
    %c0_i32_0 = arith.constant 0 : i32
    %c0_i32_1 = arith.constant 0 : i32
    return %c0_i32, %c0_i32_0 : i32, i32
  }
  func.func @transform_2(%arg0: i32) -> (i32, i32) {
    %c0_i32 = arith.constant 0 : i32
    %c0_i32_0 = arith.constant 0 : i32
    %c0_i32_1 = arith.constant 0 : i32
    return %c0_i32, %c0_i32_0 : i32, i32
  }
  func.func @transform_3(%arg0: i32) -> (i32, i32) {
    %c0_i32 = arith.constant 0 : i32
    %c0_i32_0 = arith.constant 0 : i32
    %c0_i32_1 = arith.constant 0 : i32
    return %c0_i32, %c0_i32_0 : i32, i32
  }
  func.func @transform_4(%arg0: i32) -> (i32, i32) {
    %c0_i32 = arith.constant 0 : i32
    %c0_i32_0 = arith.constant 0 : i32
    %c0_i32_1 = arith.constant 0 : i32
    return %c0_i32, %c0_i32_0 : i32, i32
  }
  func.func @transform_5(%arg0: i32) -> (i32, i32) {
    %c0_i32 = arith.constant 0 : i32
    %c0_i32_0 = arith.constant 0 : i32
    %c0_i32_1 = arith.constant 0 : i32
    return %c0_i32, %c0_i32_0 : i32, i32
  }
}

</mosaic_0001>

<bundles_post_ra>
// kernel: tpu_custom_call.1
= control target key start
LH: loop header
LB: loop body
LE: loop exit
PB: predicated region body
PF: predicated region fallthrough
CT: control target
= control target key end

     0   :  { %10 = vsyncpa [#allocation4], 0  ;;  %s2055_s0 = inlined_call_operand.hbm [shape: f32[8,8,96], index: 0, kind: input, shape index: {}]   ;;  %s2056_s1 = inlined_call_operand.hbm [shape: f32[32,64], index: 1, kind: input, shape index: {}]   ;;  %s2057_s2 = inlined_call_operand.hbm [shape: f32[32,32], index: 2, kind: input, shape index: {}]   ;;  %s2058_s3 = inlined_call_operand.hbm [shape: f32[32,128], index: 3, kind: input, shape index: {}]   ;;  %s2059_s4 = inlined_call_operand.vmem [shape: f32[1,128], index: 4, kind: input, shape index: {}]   ;;  %s2060_s5 = inlined_call_operand.hbm [shape: f32[8,128], index: 5, kind: output, shape index: {}]  }
   0x1   :  { %12 = vsyncpa [#allocation4 + $0x1], 0 }
   0x2   :  { %13 = vsyncpa [#allocation7], 0 }
   0x3   :  { %14 = vsyncpa [#allocation10], 0 }
   0x4   :  { %15 = vsyncpa [#allocation5], 0  ;;  %s1727_s18 = smov 0   ;;  %s1729_s19 = smov 0  }
   0x5   :  { %s1731_s20 = smov 0   ;;  %s1733_s21 = smov 0  }
   0x6 LB: > { %s1746_s22 = sadd.s32 4294967295, %s1678_s21   ;;  %p41_p0 = scmp.ne.s32.totalorder %s1670_s19, %s1666_s18  ;;  %s1678_s21 = sphi %s1733_s21, %s2079_s21   ;;  %s1674_s20 = sphi %s1731_s20, %s2078_s20   ;;  %s1670_s19 = sphi %s1729_s19, %s2077_s19   ;;  %s1666_s18 = sphi %s1727_s18, %s2076_s18  }
   0x7   : > { %p2061_p1 = scmp.eq.s32.totalorder %s1746_s22, 0  ;;  %p1144_p2 = scmp.ge.s32.totalorder %s1678_s21, 1 }
   0x8   : > { %p157_p3 = scmp.lt.s32.totalorder %s1678_s21, 3  ;;  %s1680_s25 = smov [#allocation6]  }
   0x9   : > { %p1755_p5 = por %p2061_p1, %p41_p0  ;;  %s169_s26 = sshll.u32 %s1680_s25, 4  ;;  %s1763_s26 = int_to_ptr.vmem [resolvable:$true] %s169_s26 }
   0xa   : > { %p1759_p6 = pnand %p1144_p2, %p157_p3  ;;  %s1681_s28 = smov [#allocation8]  }
   0xb   : > { %s2064_s23 = scalar_select %p1755_p5, 1, 0 }
   0xc   : > { %s2065_s24 = scalar_select %p1759_p6, 1, 0 }
   0xd   : > { %p1397_p7 = pneg %p1759_p6  ;;  %s182_s29 = sshll.u32 %s1681_s28, 4  ;;  %s1773_s29 = int_to_ptr.vmem [resolvable:$true] %s182_s29 }
   0xe   : > { %s1682_s30 = smov [#allocation9]   ;;  %s1492_s9 = scalar_lea.hbm %s2056_s1, 512 }
   0xf   : > { %p1769_p8 = pnand %p1397_p7, %p2061_p1  ;;  %s1775_s6 = sshll.u32 %s1682_s30, 4  ;;  %s196_s6 = int_to_ptr.vmem [resolvable:$true] %s1775_s6 }
  0x10   : > { %p1493_p9 = scmp.ne.s32.totalorder %s2056_s1, %s1492_s9  ;;  %p1499_p13 = scmp.lt.u32.totalorder %s1492_s9, %s2056_s1 }
  0x11   : > { %p1785_p10 = pneg %p1769_p8 }
  0x13   : > { %p1495_p11 = pnand %p1785_p10, %p1493_p9 }
  0x15   : > { %p1496_p12 = pneg %p1495_p11 }
  0x17   : > { %p1501_p0 = pnand %p1499_p13, %p1496_p12 }
  0x19   : > { %1504 = shalt.err (!%p1501_p0)
}
  0x1a   : > { %s1505_s15 = scalar_lea.vmem %s1763_s26, 512  ;;  %p1513_p4 = scmp.lt.s32.totalorder %s1763_s26, %s1763_s26 }
  0x1b   : > { %p1506_p2 = scmp.ne.s32.totalorder %s1763_s26, %s1505_s15  ;;  %p1514_p1 = scmp.lt.s32.totalorder %s1505_s15, %s1505_s15 }
  0x1d   : > { %p1508_p3 = pnand %p1506_p2, %p1785_p10  ;;  %p1515_p9 = por %p1514_p1, %p1513_p4 }
  0x1f   : > { %p1509_p7 = pneg %p1508_p3 }
  0x21   : > { %p1516_p11 = pnand %p1515_p9, %p1509_p7 }
  0x23   : > { %1519 = shalt.err (!%p1516_p11)
}
  0x24   : > { %s1683_s16 = smov 128   ;;  %s1684_s17 = smov 8  }
  0x25   : > { %1400 = dma.hbm_to_vmem [thread:$0]  (!%p1769_p8), %s2056_s1, 512, %s1763_s26, [#allocation7], %s1683_s16, %s1683_s16, %s1684_s17  }
  0x26   : > { %s1520_s7 = scalar_lea.hbm %s2057_s2, 512 }
  0x27   : > { %p1521_p1 = scmp.ne.s32.totalorder %s2057_s2, %s1520_s7  ;;  %p1527_p13 = scmp.lt.u32.totalorder %s1520_s7, %s2057_s2 }
  0x29   : > { %p1523_p4 = pnand %p1521_p1, %p1785_p10 }
  0x2b   : > { %p1524_p12 = pneg %p1523_p4 }
  0x2d   : > { %p1529_p0 = pnand %p1527_p13, %p1524_p12 }
  0x2f   : > { %1532 = shalt.err (!%p1529_p0)
}
  0x30   : > { %s1533_s26 = scalar_lea.vmem %s1773_s29, 512  ;;  %p1541_p9 = scmp.lt.s32.totalorder %s1773_s29, %s1773_s29 }
  0x31   : > { %p1534_p2 = scmp.ne.s32.totalorder %s1773_s29, %s1533_s26  ;;  %p1542_p11 = scmp.lt.s32.totalorder %s1533_s26, %s1533_s26 }
  0x33   : > { %p1536_p3 = pnand %p1534_p2, %p1785_p10  ;;  %p1543_p1 = por %p1542_p11, %p1541_p9 }
  0x35   : > { %p1537_p7 = pneg %p1536_p3 }
  0x37   : > { %p1544_p4 = pnand %p1543_p1, %p1537_p7 }
  0x39   : > { %1547 = shalt.err (!%p1544_p4)
}
  0x3a   : > { %1403 = dma.hbm_to_vmem [thread:$0]  (!%p1769_p8), %s2057_s2, 512, %s1773_s29, [#allocation7], %s1683_s16, %s1683_s16, %s1684_s17  }
  0x3b   : > { %s1548_s25 = scalar_lea.hbm %s2058_s3, 512 }
  0x3c   : > { %p1549_p12 = scmp.ne.s32.totalorder %s2058_s3, %s1548_s25  ;;  %p1555_p2 = scmp.lt.u32.totalorder %s1548_s25, %s2058_s3 }
  0x3e   : > { %p1551_p13 = pnand %p1549_p12, %p1785_p10 }
  0x40   : > { %p1552_p0 = pneg %p1551_p13 }
  0x42   : > { %p1557_p3 = pnand %p1555_p2, %p1552_p0 }
  0x44   : > { %1560 = shalt.err (!%p1557_p3)
}
  0x45   : > { %s1561_s9 = scalar_lea.vmem %s196_s6, 512  ;;  %p1569_p1 = scmp.lt.s32.totalorder %s196_s6, %s196_s6 }
  0x46   : > { %p1562_p7 = scmp.ne.s32.totalorder %s196_s6, %s1561_s9  ;;  %p1570_p4 = scmp.lt.s32.totalorder %s1561_s9, %s1561_s9 }
  0x48   : > { %p1564_p9 = pnand %p1562_p7, %p1785_p10  ;;  %p1571_p5 = por %p1570_p4, %p1569_p1 }
  0x4a   : > { %p1565_p11 = pneg %p1564_p9 }
  0x4c   : > { %p1572_p6 = pnand %p1571_p5, %p1565_p11 }
  0x4e   : > { %1575 = shalt.err (!%p1572_p6)
}
  0x4f   : > { %1406 = dma.hbm_to_vmem [thread:$0]  (!%p1769_p8), %s2058_s3, 512, %s196_s6, [#allocation10], %s1683_s16, %s1683_s16, %s1684_s17  }
  0x50   : > { %s1858_s12 = sadd.s32 1, %s1678_s21   ;;  %s28_s11 = sadd.s32 1, %s1674_s20 }
  0x51   : > { %s25_s27 = ssub.s32 %s1678_s21, %s1858_s12  ;;  %p35_p6 = scmp.ne.s32.totalorder %s1674_s20, %s1670_s19 }
  0x52   : > { %p26_p5 = scmp.eq.s32.totalorder %s25_s27, 0  ;;  %p36_p10 = scmp.eq.s32.totalorder %s1678_s21, 0 }
  0x53   : > { %p1414_p12 = scmp.lt.s32.totalorder %s1678_s21, 2  ;;  %s212_s13 = sand.u32 1, %s1674_s20  }
  0x54   : > { %s1868_s26 = scalar_select %p26_p5, %s1674_s20, %s28_s11  }
  0x55   : > { %p37_p13 = por %p36_p10, %p35_p6  ;;  %s1149_s14 = sshll.u32 %s212_s13, 5 }
  0x56   : > { %s1180_s15 = sshll.u32 %s1678_s21, 9  ;;  %s216_s6 = scalar_lea.vmem [#allocation3], %s1149_s14 }
  0x57   : > { %s1875_s28 = scalar_lea.hbm %s2055_s0, %s1180_s15  ;;  %s223_s30 = sshll.u32 %s216_s6, 4  ;;  %s1877_s30 = int_to_ptr.vmem [resolvable:$true] %s223_s30 }
  0x58   : > { %p1879_p8 = pnand %p1414_p12, %p37_p13  ;;  %s1883_s21 = scalar_lea.sflag [#allocation4], %s212_s13 }
  0x59   : > { %s1576_s8 = scalar_lea.hbm %s1875_s28, 512  ;;  %s1581_s10 = scalar_lea.hbm %s2055_s0, 1024 }
  0x5a   : > { %p1577_p0 = scmp.ne.s32.totalorder %s1875_s28, %s1576_s8  ;;  %p1578_p2 = pneg %p1879_p8 }
  0x5b   : > { %p1582_p9 = scmp.lt.u32.totalorder %s1875_s28, %s2055_s0  ;;  %p1583_p11 = scmp.lt.u32.totalorder %s1581_s10, %s1576_s8 }
  0x5c   : > { %p1579_p3 = pnand %p1578_p2, %p1577_p0  ;;  %p1585_p4 = scmp.lt.u32.totalorder %s1576_s8, %s1875_s28 }
  0x5d   : > { %p1584_p1 = por %p1583_p11, %p1582_p9 }
  0x5e   : > { %p1580_p7 = pneg %p1579_p3 }
  0x5f   : > { %p1586_p5 = por %p1585_p4, %p1584_p1 }
  0x61   : > { %p1587_p6 = pnand %p1586_p5, %p1580_p7 }
  0x63   : > { %1590 = shalt.err (!%p1587_p6)
}
  0x64   : > { %s1591_s13 = scalar_lea.vmem %s1877_s30, 512  ;;  %s1685_s14 = smov [#allocation3]  }
  0x65   : > { %p1592_p10 = scmp.ne.s32.totalorder %s1877_s30, %s1591_s13  ;;  %s1596_s15 = sshll.u32 %s1685_s14, 4  ;;  %s1597_s15 = int_to_ptr.vmem [resolvable:$false] %s1596_s15 }
  0x66   : > { %s1598_s18 = scalar_lea.vmem %s1597_s15, 1024  ;;  %p1599_p0 = scmp.lt.s32.totalorder %s1877_s30, %s1597_s15 }
  0x67   : > { %p1594_p12 = pnand %p1592_p10, %p1578_p2  ;;  %p1600_p3 = scmp.lt.s32.totalorder %s1598_s18, %s1591_s13 }
  0x69   : > { %p1595_p13 = pneg %p1594_p12  ;;  %p1601_p9 = por %p1600_p3, %p1599_p0 }
  0x6b   : > { %p1602_p11 = pnand %p1601_p9, %p1595_p13 }
  0x6d   : > { %1605 = shalt.err (!%p1602_p11)
}
  0x6e   : > { %1410 = dma.hbm_to_vmem [thread:$0]  (!%p1879_p8), %s1875_s28, 512, %s1877_s30, %s1883_s21, %s1683_s16, %s1683_s16, %s1684_s17  }
  0x6f   : > { %p2069_p2 = scmp.ne.s32.totalorder %s2065_s24, 0 }
  0x70   : > { %s237_s25 = sand.u32 (!%p2069_p2), 1, %s1670_s19   ;;  %p2070_p7 = scmp.ne.s32.totalorder (!%p2069_p2), %s2064_s23, 0 }
  0x71   : > { %235 = sbr.rel (%p2069_p2) target bundleno = 2730 (0xaaa), region = 40  ;;  %s1153_s6 = sshll.u32 (!%p2069_p2), %s237_s25, 5 }
  0x72   : > { %s238_s8 = scalar_lea.sflag (!%p2069_p2), [#allocation4], %s237_s25  ;;  %s1917_s9 = scalar_lea.vmem (!%p2069_p2), [#allocation3], %s1153_s6 }
  0x78   : > { %1649 = dma.done.wait (%p2070_p7), %s238_s8, 512  }
  0x79   : > { %1651 = vsyncadd (%p2070_p7), %s238_s8, 4294966784  ;;  %p2071_p1 = scmp.eq.s32.totalorder %s1746_s22, 0 }
  0x7b   : > { %1653 = dma.done.wait (%p2071_p1), [#allocation7], 1024   ;;  %p2072_p8 = pmov %p2071_p1 }
  0x7c   : > { %p2073_p4 = pmov %p2071_p1 }
  0x7d   : > { %1655 = vsyncadd (%p2072_p8), [#allocation7], 4294966272 }
  0x7e   : > { %1657 = dma.done.wait (%p2073_p4), [#allocation10], 512   ;;  %p2074_p5 = pmov %p2071_p1 }
  0x7f   : > { %p2075_p6 = scmp.ne.s32.totalorder %s1746_s22, 0 }
  0x80   : > { %1659 = vsyncadd (%p2074_p5), [#allocation10], 4294966784  ;;  %vm280_vm0 = vcmask (!%p2075_p6), 261120   ;;  %v1686_v0 = vmov (!%p2075_p6), 0.0  }
  0x81   : > { %279 = sbr.rel (%p2075_p6) target bundleno = 136 (0x88), region = 60  ;;  %281 = vst.msk [vmem:[#allocation2] sm:$0xff] (!%p2075_p6), %vm280_vm0, %v1686_v0 }
  0x88 PF: > { %v284_v1 = vld [vmem:[#allocation6] sm:$0xff]  ;;  %v285_v2 = vld [vmem:[#allocation6 + $0x8] sm:$0xff]  ;;  %v286_v3 = vld [vmem:[#allocation6 + $0x10] sm:$0xff]  ;;  %v1687_v4 = vmov 0.0|0.0   ;;  %vm1688_vm1 = vmmov 0   ;;  %v1689_v7 = vmov 0.0  }
  0x89   : > { %1325 = vmatprep.subr.bf16.mxu0 %v1687_v4  ;;  %v1934_v5 = vpack.c.bf16 %v285_v2, %v284_v1  ;;  %v287_v6 = vld [vmem:[#allocation6 + $0x18] sm:$0xff]  ;;  %1234 = vmatprep.mubr.msk.f32.mxu0 %vm1688_vm1, %v1689_v7  ;;  %s1690_s23 = smov 32   ;;  %vm288_vm2 = vcmask 261120   ;;  %v372_v10 = vld [vmem:[#allocation8] sm:$0xff]  ;;  %v373_v11 = vld [vmem:[#allocation8 + $0x8] sm:$0xff]  ;;  %s1691_s24 = smov 64  }
  0x8a   : > { %v282_v8 = vld [vmem:[#allocation2] sm:$0xff]  ;;  %1331 = vmatprep.subr.bf16.mxu1 %v1687_v4  ;;  %v1941_v9 = vpack.c.bf16 %v287_v6, %v286_v3  ;;  %1245 = vmatprep.mubr.msk.f32.mxu1 %vm1688_vm1, %v1689_v7  ;;  %v374_v12 = vld [vmem:[#allocation8 + $0x10] sm:$0xff]  ;;  %v1955_v13 = vpack.c.bf16 %v373_v11, %v372_v10  ;;  %v283_v16 = vld [vmem:[%s1917_s9] sm:$0xff]  ;;  %s1692_s16 = smov 96   ;;  %p1173_p10 = scmp.ne.s32.totalorder %s1746_s22, 1 }
  0x8b   : > { %368 = vrot.lane.b32.xlu0 %v282_v8, %s1690_s23  ;;  %1327 = vmatpush3.bf16.msra.mxu0 %v1934_v5  ;;  %v375_v14 = vld [vmem:[#allocation8 + $0x18] sm:$0xff]  ;;  %v1161_v36 = vld [vmem:[%s1917_s9 + $0x8] sm:$0xff]  ;;  %v1165_v56 = vld [vmem:[%s1917_s9 + $0x10] sm:$0xff]  ;;  %vm1694_vm3 = vmmov (!%p1173_p10), 0  }
  0x8c   : > { %1328 = vmatprep.subr.bf16.mxu0 %v1687_v4  ;;  %1333 = vmatpush3.bf16.msra.mxu1 %v1955_v13  ;;  %v1958_v15 = vpack.c.bf16 %v375_v14, %v374_v12 }
  0x8d   : > { %1334 = vmatprep.subr.bf16.mxu1 %v1687_v4  ;;  %380 = vrot.lane.b32.xlu1 %v283_v16, %s1691_s24 }
  0x8f   : > { %1330 = vmatpush3.bf16.msra.mxu0 %v1941_v9 }
  0x90   : > { %1337 = vmatprep.subr.bf16.mxu0 %v1687_v4  ;;  %1336 = vmatpush3.bf16.msra.mxu1 %v1958_v15 }
  0x91   : > { %1343 = vmatprep.subr.bf16.mxu1 %v1687_v4 }
  0x92   : > { %1235 = vmatmul.mubr.msk.f32.vlgmr.msra.gmra.mrb[0].mxu0 %vm288_vm2, %v282_v8 }
  0x93   : > { %1339 = vmatpush3.bf16.msra.mxu0 %v1934_v5  ;;  %1256 = vmatprep.mubr.msk.f32.mxu0 %vm1688_vm1, %v1689_v7 }
  0x94   : > { %1340 = vmatprep.subr.bf16.mxu0 %v1687_v4 }
  0x97   : > { %1342 = vmatpush3.bf16.msra.mxu0 %v1941_v9 }
  0x98   : > { %1349 = vmatprep.subr.bf16.mxu0 %v1687_v4 }
  0xfd   : > { %v369_v23 = vpop.permute.xlu0 %368 }
  0xff   : > { %v381_v27 = vpop.permute.xlu1 %380 }
 0x165   : > { %v358_v17 = vpop.f32.mrb[0].mxu0 }
 0x166   : > { %v359_v18 = vadd.f32 %v358_v17, %v283_v16  ;;  %v1236_v19 = vpop.f32.mrb[1].mxu0 }
 0x168   : > { %v1159_v20 = vmul.f32 -1.442695, %v359_v18 }
 0x16a   : > { %1468 = vpow2.f32 %v1159_v20 }
 0x174   : > { %v1469_v21 = vpop.eup %1468 }
 0x175   : > { %v365_v22 = vadd.f32 1.0, %v1469_v21 }
 0x177   : > { %1470 = vrcp.f32 %v365_v22 }
 0x181   : > { %v1471_v24 = vpop.eup %1470 }
 0x182   : > { %v371_v25 = vmul.f32 %v1471_v24, %v369_v23  ;;  %v456_v31 = vsub.f32 1.0, %v1471_v24 }
 0x184   : > { %377 = vrot.lane.b32.xlu0 %v371_v25, %s1692_s16  ;;  %v457_v33 = vmul.f32 %v456_v31, %v282_v8 }
 0x1f6   : > { %v378_v26 = vpop.permute.xlu0 %377 }
 0x1f7   : > { %1246 = vmatmul.mubr.msk.f32.vlgmr.msra.gmra.mrb[0].mxu1 %vm288_vm2, %v378_v26 }
 0x1f8   : > { %1345 = vmatpush3.bf16.msra.mxu1 %v1955_v13  ;;  %1267 = vmatprep.mubr.msk.f32.mxu1 %vm1688_vm1, %v1689_v7 }
 0x1f9   : > { %1346 = vmatprep.subr.bf16.mxu1 %v1687_v4 }
 0x1fc   : > { %1348 = vmatpush3.bf16.msra.mxu1 %v1958_v15 }
 0x1fd   : > { %1355 = vmatprep.subr.bf16.mxu1 %v1687_v4 }
 0x2ca   : > { %v451_v28 = vpop.f32.mrb[0].mxu1 }
 0x2cb   : > { %v452_v29 = vadd.f32 %v451_v28, %v381_v27  ;;  %v1247_v30 = vpop.f32.mrb[1].mxu1 }
 0x2cd   : > { %1472 = vtanh.f32 %v452_v29 }
 0x2d7   : > { %v1473_v32 = vpop.eup %1472 }
 0x2d8   : > { %v458_v34 = vmul.f32 %v1473_v32, %v1471_v24  ;;  %v972_v32 = vld [vmem:[#allocation9] sm:$0xff] (!%p1173_p10) }
 0x2da   : > { %v459_v35 = vadd.f32 %v458_v34, %v457_v33  ;;  %v973_v33 = vld [vmem:[#allocation9 + $0x8] sm:$0xff] (!%p1173_p10)  ;;  %v974_v34 = vld [vmem:[#allocation9 + $0x10] sm:$0xff] (!%p1173_p10) }
 0x2dc   : > { %541 = vrot.lane.b32.xlu1 %v459_v35, %s1690_s23  ;;  %1257 = vmatmul.mubr.msk.f32.vlgmr.msra.gmra.mrb[2].mxu0 %vm288_vm2, %v459_v35 }
 0x2dd   : > { %1351 = vmatpush3.bf16.msra.mxu0 %v1934_v5  ;;  %1278 = vmatprep.mubr.msk.f32.mxu0 %vm1688_vm1, %v1689_v7 }
 0x2de   : > { %1352 = vmatprep.subr.bf16.mxu0 %v1687_v4 }
 0x2e0   : > { %549 = vrot.lane.b32.xlu1 %v1161_v36, %s1691_s24 }
 0x2e1   : > { %1354 = vmatpush3.bf16.msra.mxu0 %v1941_v9 }
 0x2e2   : > { %1361 = vmatprep.subr.bf16.mxu0 %v1687_v4 }
 0x34e   : > { %v542_v44 = vpop.permute.xlu1 %541 }
 0x352   : > { %v550_v47 = vpop.permute.xlu1 %549 }
 0x3af   : > { %v531_v37 = vpop.f32.mrb[2].mxu0 }
 0x3b0   : > { %v532_v38 = vadd.f32 %v1161_v36, %v531_v37  ;;  %v1258_v39 = vpop.f32.mrb[3].mxu0  ;;  %v1374_v36 = vpack.c.bf16 (!%p1173_p10), %v973_v33, %v972_v32  ;;  %v975_v37 = vld [vmem:[#allocation9 + $0x18] sm:$0xff] (!%p1173_p10) }
 0x3b1   : > { %v1377_v39 = vpack.c.bf16 (!%p1173_p10), %v975_v37, %v974_v34 }
 0x3b2   : > { %v1163_v40 = vmul.f32 -1.442695, %v532_v38  ;;  %v1695_v38 = vmov (!%p1173_p10), 0.0  }
 0x3b4   : > { %1474 = vpow2.f32 %v1163_v40  ;;  %v1174_v40 = vld [vmem:[%s2059_s4] ss:$0 sm:$0xff] (!%p1173_p10) }
 0x3be   : > { %v1475_v41 = vpop.eup %1474 }
 0x3bf   : > { %v538_v42 = vadd.f32 1.0, %v1475_v41 }
 0x3c1   : > { %1476 = vrcp.f32 %v538_v42 }
 0x3cb   : > { %v1477_v43 = vpop.eup %1476 }
 0x3cc   : > { %v544_v45 = vmul.f32 %v1477_v43, %v542_v44  ;;  %v625_v51 = vsub.f32 1.0, %v1477_v43 }
 0x3ce   : > { %546 = vrot.lane.b32.xlu0 %v544_v45, %s1692_s16  ;;  %v626_v53 = vmul.f32 %v625_v51, %v459_v35  ;;  %v1693_v35 = vmov (!%p1173_p10), 0.0|0.0  }
 0x440   : > { %v547_v46 = vpop.permute.xlu0 %546 }
 0x441   : > { %1268 = vmatmul.mubr.msk.f32.vlgmr.msra.gmra.mrb[2].mxu1 %vm288_vm2, %v547_v46 }
 0x442   : > { %1357 = vmatpush3.bf16.msra.mxu1 %v1955_v13  ;;  %1289 = vmatprep.mubr.msk.f32.mxu1 %vm1688_vm1, %v1689_v7 }
 0x443   : > { %1358 = vmatprep.subr.bf16.mxu1 %v1687_v4 }
 0x446   : > { %1360 = vmatpush3.bf16.msra.mxu1 %v1958_v15 }
 0x447   : > { %1367 = vmatprep.subr.bf16.mxu1 %v1687_v4 }
 0x514   : > { %v620_v48 = vpop.f32.mrb[2].mxu1 }
 0x515   : > { %v621_v49 = vadd.f32 %v620_v48, %v550_v47  ;;  %v1269_v50 = vpop.f32.mrb[3].mxu1 }
 0x517   : > { %1478 = vtanh.f32 %v621_v49 }
 0x521   : > { %v1479_v52 = vpop.eup %1478 }
 0x522   : > { %v627_v54 = vmul.f32 %v1479_v52, %v1477_v43 }
 0x524   : > { %v628_v55 = vadd.f32 %v627_v54, %v626_v53 }
 0x526   : > { %710 = vrot.lane.b32.xlu0 %v628_v55, %s1690_s23  ;;  %1279 = vmatmul.mubr.msk.f32.vlgmr.msra.gmra.mrb[4].mxu0 %vm288_vm2, %v628_v55 }
 0x527   : > { %1363 = vmatpush3.bf16.msra.mxu0 %v1934_v5  ;;  %1300 = vmatprep.mubr.msk.f32.mxu0 %vm1688_vm1, %v1689_v7 }
 0x528   : > { %1364 = vmatprep.subr.bf16.mxu0 %v1687_v4 }
 0x52a   : > { %718 = vrot.lane.b32.xlu0 %v1165_v56, %s1691_s24 }
 0x52b   : > { %1366 = vmatpush3.bf16.msra.mxu0 %v1941_v9 }
 0x52c   : > { %1373 = vmatprep.subr.bf16.mxu0 (!%p1173_p10), %v1693_v35 }
 0x598   : > { %v711_v0 = vpop.permute.xlu0 %710 }
 0x59c   : > { %v719_v3 = vpop.permute.xlu0 %718 }
 0x5f9   : > { %v700_v57 = vpop.f32.mrb[4].mxu0 }
 0x5fa   : > { %v701_v58 = vadd.f32 %v1165_v56, %v700_v57  ;;  %v1280_v59 = vpop.f32.mrb[5].mxu0 }
 0x5fc   : > { %v1167_v60 = vmul.f32 -1.442695, %v701_v58 }
 0x5fe   : > { %1480 = vpow2.f32 %v1167_v60 }
 0x608   : > { %v1481_v61 = vpop.eup %1480 }
 0x609   : > { %v707_v62 = vadd.f32 1.0, %v1481_v61 }
 0x60b   : > { %1482 = vrcp.f32 %v707_v62 }
 0x615   : > { %v1483_v63 = vpop.eup %1482 }
 0x616   : > { %v713_v1 = vmul.f32 %v1483_v63, %v711_v0  ;;  %v794_v9 = vsub.f32 1.0, %v1483_v63 }
 0x618   : > { %715 = vrot.lane.b32.xlu1 %v713_v1, %s1692_s16  ;;  %v795_v11 = vmul.f32 %v794_v9, %v628_v55 }
 0x68a   : > { %v716_v2 = vpop.permute.xlu1 %715 }
 0x68b   : > { %1290 = vmatmul.mubr.msk.f32.vlgmr.msra.gmra.mrb[4].mxu1 %vm288_vm2, %v716_v2 }
 0x68c   : > { %1369 = vmatpush3.bf16.msra.mxu1 %v1955_v13  ;;  %1311 = vmatprep.mubr.msk.f32.mxu1 %vm1688_vm1, %v1689_v7  ;;  %v1169_v13 = vld [vmem:[%s1917_s9 + $0x18] sm:$0xff] }
 0x68d   : > { %1370 = vmatprep.subr.bf16.mxu1 %v1687_v4 }
 0x690   : > { %1372 = vmatpush3.bf16.msra.mxu1 %v1958_v15 }
 0x75e   : > { %v789_v5 = vpop.f32.mrb[4].mxu1 }
 0x75f   : > { %v790_v6 = vadd.f32 %v789_v5, %v719_v3  ;;  %v1291_v8 = vpop.f32.mrb[5].mxu1 }
 0x761   : > { %1484 = vtanh.f32 %v790_v6 }
 0x76b   : > { %v1485_v10 = vpop.eup %1484 }
 0x76c   : > { %v796_v12 = vmul.f32 %v1485_v10, %v1483_v63 }
 0x76e   : > { %v797_v14 = vadd.f32 %v796_v12, %v795_v11 }
 0x770   : > { %879 = vrot.lane.b32.xlu1 %v797_v14, %s1690_s23  ;;  %1301 = vmatmul.mubr.msk.f32.vlgmr.msra.gmra.mrb[6].mxu0 %vm288_vm2, %v797_v14 }
 0x771   : > { %1322 = vmatprep.mubr.msk.f32.mxu0 (!%p1173_p10), %vm1694_vm3, %v1695_v38  ;;  %1375 = vmatpush3.bf16.msra.mxu0 (!%p1173_p10), %v1374_v36 }
 0x772   : > { %1376 = vmatprep.subr.bf16.mxu0 (!%p1173_p10), %v1693_v35 }
 0x774   : > { %887 = vrot.lane.b32.xlu1 %v1169_v13, %s1691_s24 }
 0x775   : > { %1378 = vmatpush3.bf16.msra.mxu0 (!%p1173_p10), %v1377_v39 }
 0x7e2   : > { %v880_v20 = vpop.permute.xlu1 %879 }
 0x7e6   : > { %v888_v23 = vpop.permute.xlu1 %887 }
 0x843   : > { %v869_v4 = vpop.f32.mrb[6].mxu0 }
 0x844   : > { %v870_v7 = vadd.f32 %v1169_v13, %v869_v4  ;;  %v1302_v15 = vpop.f32.mrb[7].mxu0 }
 0x846   : > { %v1171_v16 = vmul.f32 -1.442695, %v870_v7 }
 0x848   : > { %1486 = vpow2.f32 %v1171_v16 }
 0x852   : > { %v1487_v17 = vpop.eup %1486 }
 0x853   : > { %v876_v18 = vadd.f32 1.0, %v1487_v17 }
 0x855   : > { %1488 = vrcp.f32 %v876_v18 }
 0x85f   : > { %v1489_v19 = vpop.eup %1488 }
 0x860   : > { %v882_v21 = vmul.f32 %v1489_v19, %v880_v20  ;;  %v963_v27 = vsub.f32 1.0, %v1489_v19 }
 0x862   : > { %884 = vrot.lane.b32.xlu0 %v882_v21, %s1692_s16  ;;  %v964_v29 = vmul.f32 %v963_v27, %v797_v14 }
 0x8d4   : > { %v885_v22 = vpop.permute.xlu0 %884 }
 0x8d5   : > { %1312 = vmatmul.mubr.msk.f32.vlgmr.msra.gmra.mrb[6].mxu1 %vm288_vm2, %v885_v22 }
 0x9a8   : > { %v958_v24 = vpop.f32.mrb[6].mxu1 }
 0x9a9   : > { %v959_v25 = vadd.f32 %v958_v24, %v888_v23  ;;  %v1313_v26 = vpop.f32.mrb[7].mxu1 }
 0x9ab   : > { %1490 = vtanh.f32 %v959_v25 }
 0x9b4   : > { %971 = sbr.rel (%p1173_p10) target bundleno = 2705 (0xa91), region = 64 }
 0x9b5   : > { %v1491_v28 = vpop.eup %1490 }
 0x9b6   : > { %v965_v30 = vmul.f32 %v1491_v28, %v1489_v19 }
 0x9b8   : > { %v966_v31 = vadd.f32 %v965_v30, %v964_v29 }
 0x9ba   : > { %967 = vst.msk [vmem:[#allocation2] sm:$0xff] %vm288_vm2, %v966_v31  ;;  %1323 = vmatmul.mubr.msk.f32.vlgmr.msra.gmra.mrb[0].mxu0 (!%p1173_p10), %vm288_vm2, %v966_v31 }
 0xa8d   : > { %v1052_v41 = vpop.f32.mrb[0].mxu0 }
 0xa8e   : > { %v1053_v42 = vadd.f32 %v1174_v40, %v1052_v41  ;;  %v1324_v43 = vpop.f32.mrb[1].mxu0 }
 0xa90   : > { %1056 = vst [vmem:[#allocation11] sm:$0xff] %v1053_v42 }
 0xa91 PF: > { %p1418_p12 = scmp.eq.s32.totalorder %s1746_s22, 1  ;;  %s1696_s30 = smov [#allocation11]  }
 0xa92   : > { %s1064_s7 = sshll.u32 %s1696_s30, 4  ;;  %s1065_s7 = int_to_ptr.vmem [resolvable:$true] %s1064_s7 }
 0xa93   : > { %s1606_s21 = scalar_lea.vmem %s1065_s7, 128  ;;  %p1613_p9 = scmp.lt.s32.totalorder %s1065_s7, %s1065_s7 }
 0xa94   : > { %p1607_p13 = scmp.ne.s32.totalorder %s1065_s7, %s1606_s21  ;;  %p1614_p11 = scmp.lt.s32.totalorder %s1606_s21, %s1606_s21 }
 0xa96   : > { %p1608_p0 = pnand %p1607_p13, %p1418_p12  ;;  %p1615_p2 = por %p1614_p11, %p1613_p9 }
 0xa98   : > { %p1609_p3 = pneg %p1608_p0 }
 0xa9a   : > { %p1616_p7 = pnand %p1615_p2, %p1609_p3 }
 0xa9c   : > { %1619 = shalt.err (!%p1616_p7)
}
 0xa9d   : > { %s1620_s27 = scalar_lea.hbm %s2060_s5, 128 }
 0xa9e   : > { %p1621_p1 = scmp.ne.s32.totalorder %s2060_s5, %s1620_s27  ;;  %p1626_p5 = scmp.lt.u32.totalorder %s1620_s27, %s2060_s5 }
 0xaa0   : > { %p1622_p8 = pnand %p1621_p1, %p1418_p12 }
 0xaa2   : > { %p1623_p4 = pneg %p1622_p8 }
 0xaa4   : > { %p1628_p6 = pnand %p1626_p5, %p1623_p4 }
 0xaa6   : > { %1631 = shalt.err (!%p1628_p6)
}
 0xaa7   : > { %1394 = dma.vmem_to_hbm [thread:$0]  (%p1418_p12), %s1065_s7, 128, %s2060_s5, [#allocation5]  }
 0xaa8   : > { %1661 = dma.done.wait (%p1418_p12), [#allocation5], 128  }
 0xaa9   : > { %1663 = vsyncadd (%p1418_p12), [#allocation5], 4294967168 }
 0xaaa PF: > { %p18_p10 = scmp.ge.s32.totalorder %s1858_s12, 4   ;;  %s2076_s18 = smov %s1670_s19 }
 0xaab   : > { %s2077_s19 = smov %s1674_s20  ;;  %s2078_s20 = smov %s1868_s26 }
 0xaac   : > { %s2079_s21 = smov %s1858_s12  ;;  %20 = sbr.rel (!%p18_p10) target bundleno = 6 (0x6), region = 100 }
 0xab3   :  { %1077 = vsyncpa [#allocation4], 1 }
 0xab4   :  { %1079 = vsyncpa [#allocation4 + $0x1], 1 }
 0xab5   :  { %1080 = vsyncpa [#allocation7], 1 }
 0xab6   :  { %1081 = vsyncpa [#allocation10], 1 }
 0xab7   :  { %1082 = vsyncpa [#allocation5], 1 }
 0xab8   :  { %1084 = vsyncpa [#allocation5 + $0x1], 1 }

</bundles_post_ra>
